<compile_context>
chip_gen: v6e
topology: v6e:2x2x1
jax: 0.10.0
libtpu: 0.0.40
codegen_flags: <defaults>
</compile_context>

<pallas_src>
import functools
import math

import jax
import jax.numpy as jnp
from jax.experimental import pallas as pl
from jax.experimental.pallas import tpu as pltpu


COMPUTE_DTYPE = jnp.bfloat16          # MXU input dtype; accumulation stays f32

_TM = 512                             # row tile (tokens) for FFN / LN / dense grids
_TI = 512                             # FFN intermediate-dim chunk (contraction of w2)
_TN = 512                             # column tile for the standalone dense (pooler)
_VMEM_LIMIT_BYTES = 48 * 1024 * 1024  # explicit scoped-VMEM budget (fits v7x's 64 MiB)


# ------------------------------ small math helpers ------------------------------

def _gelu(x_f32):
    # TODO(synk): HF BERT default is erf-GELU; tanh approximation differs by ~1e-3.
    c = math.sqrt(2.0 / math.pi)
    return 0.5 * x_f32 * (1.0 + jnp.tanh(c * (x_f32 + 0.044715 * x_f32 * x_f32 * x_f32)))


def _ln_math(x_f32, g_ref, b_ref, eps):
    mu = jnp.mean(x_f32, axis=-1, keepdims=True)
    xc = x_f32 - mu
    var = jnp.mean(xc * xc, axis=-1, keepdims=True)
    return (xc * jax.lax.rsqrt(var + eps) * g_ref[...].astype(jnp.float32)
            + b_ref[...].astype(jnp.float32))


# ------------------------------- Pallas kernels ---------------------------------

def _attn_block_kernel(x_ref, wqkv_ref, bqkv_ref, wo_ref, bo_ref, m_ref,
                       g_ref, be_ref, o_ref, acc_ref, *, dh, scale, eps):
    """Fused QKV-proj + attention + out-proj + residual + LayerNorm.

    Grid = (B, nh); the head axis is the out-projection contraction ("arbitrary"),
    the accumulator stays resident in VMEM across heads.
    """
    h = pl.program_id(1)

    @pl.when(h == 0)
    def _():
        acc_ref[...] = jnp.zeros_like(acc_ref)

    x = x_ref[...]                                                    # (S, H) bf16

    # Per-head fused QKV projection; wqkv is head-major so this is a single
    # lane-dense (H, 3*dh) MXU pass (K = H consumed in one step).
    qkv = jnp.dot(x, wqkv_ref[0], preferred_element_type=jnp.float32)  # (S, 3dh) f32
    qkv = (qkv + bqkv_ref[0].astype(jnp.float32)).astype(x.dtype)       # bf16
    q = qkv[:, :dh]
    k = qkv[:, dh:2 * dh]
    v = qkv[:, 2 * dh:]

    # scores: contract on the last axes (no explicit transpose).
    s = jax.lax.dot_general(q, k, (((1,), (1,)), ((), ())),
                            preferred_element_type=jnp.float32) * scale  # (S, S)
    s = s + m_ref[0]                                                  # (1, S) mask
    s = s - jnp.max(s, axis=-1, keepdims=True)
    p = jnp.exp(s)
    denom = jnp.sum(p, axis=-1, keepdims=True)

    # PV with UN-normalized probabilities; normalize the much smaller (S, dh)
    # context afterwards with an EUP reciprocal (feedback: move work off (S,S)).
    ctx = jnp.dot(p.astype(v.dtype), v, preferred_element_type=jnp.float32)  # (S, dh)
    ctx = ctx * pl.reciprocal(denom, approx=True)

    # Out-projection contribution of this head (contraction over heads = grid axis).
    acc_ref[...] += jnp.dot(ctx.astype(x.dtype), wo_ref[0],
                            preferred_element_type=jnp.float32)        # (S, H)

    @pl.when(h == pl.num_programs(1) - 1)
    def _():
        y = (acc_ref[...] + bo_ref[...].astype(jnp.float32)
             + x_ref[...].astype(jnp.float32))                         # residual add
        o_ref[...] = _ln_math(y, g_ref, be_ref, eps).astype(o_ref.dtype)


def _ffn_block_kernel(x_ref, w1_ref, b1_ref, w2_ref, b2_ref, g_ref, be_ref,
                      o_ref, acc_ref, *, eps):
    """Fused FFN: gelu(x@w1+b1) chunk -> @w2 chunk accumulate -> +b2+res -> LayerNorm.

    Grid = (M/tm, I/ti); the intermediate activation never goes to HBM.
    """
    j = pl.program_id(1)

    @pl.when(j == 0)
    def _():
        acc_ref[...] = jnp.zeros_like(acc_ref)

    hmid = jnp.dot(x_ref[...], w1_ref[...], preferred_element_type=jnp.float32)
    hmid = _gelu(hmid + b1_ref[...].astype(jnp.float32))               # (tm, ti) f32
    acc_ref[...] += jnp.dot(hmid.astype(x_ref.dtype), w2_ref[...],
                            preferred_element_type=jnp.float32)        # (tm, H)

    @pl.when(j == pl.num_programs(1) - 1)
    def _():
        y = (acc_ref[...] + b2_ref[...].astype(jnp.float32)
             + x_ref[...].astype(jnp.float32))                         # residual add
        o_ref[...] = _ln_math(y, g_ref, be_ref, eps).astype(o_ref.dtype)


def _layernorm_kernel(x_ref, g_ref, b_ref, o_ref, *, eps):
    x = x_ref[...].astype(jnp.float32)
    o_ref[...] = _ln_math(x, g_ref, b_ref, eps).astype(o_ref.dtype)


def _dense_kernel(x_ref, w_ref, b_ref, o_ref, *, act):
    # Single-pass matmul epilogue (K consumed in one MXU stream; BERT K = H <= 1024).
    y = jnp.dot(x_ref[...], w_ref[...], preferred_element_type=jnp.float32)
    y = y + b_ref[...].astype(jnp.float32)
    if act == "tanh":
        y = jnp.tanh(y)
    elif act == "gelu":
        y = _gelu(y)
    o_ref[...] = y.astype(o_ref.dtype)


# ------------------------------- Pallas wrappers --------------------------------

def attention_block(x, wqkv, bqkv, wo, bo, mask, gamma, beta, eps=1e-12):
    # x: (B*S, H) bf16; wqkv: (nh, H, 3dh) bf16; bqkv: (nh, 1, 3dh) f32;
    # wo: (nh, dh, H) bf16; bo/gamma/beta: (1, H) f32; mask: (B, 1, S) f32 additive.
    M, H = x.shape
    nh, _, d3 = wqkv.shape
    dh = d3 // 3
    B = mask.shape[0]
    S = M // B
    scale = 1.0 / math.sqrt(dh)

    flops = 2 * M * H * 3 * H + 4 * B * nh * S * S * dh + 2 * M * H * H
    transcendentals = B * nh * S * S
    bytes_accessed = (2 * M * H * 2                      # x read + output write (bf16)
                      + nh * (H * d3 + dh * H) * 2       # weights
                      + B * S * 4 + 6 * H * 4)           # mask + biases/ln params

    kernel = functools.partial(_attn_block_kernel, dh=dh, scale=scale, eps=eps)
    return pl.pallas_call(
        kernel,
        grid=(B, nh),
        in_specs=[
            pl.BlockSpec((S, H), lambda b, h: (b, 0)),        # x (resident across h)
            pl.BlockSpec((1, H, d3), lambda b, h: (h, 0, 0)),  # wqkv (head-major)
            pl.BlockSpec((1, 1, d3), lambda b, h: (h, 0, 0)),  # bqkv
            pl.BlockSpec((1, dh, H), lambda b, h: (h, 0, 0)),  # wo (head-major rows)
            pl.BlockSpec((1, H), lambda b, h: (0, 0)),         # bo
            pl.BlockSpec((1, 1, S), lambda b, h: (b, 0, 0)),   # additive mask
            pl.BlockSpec((1, H), lambda b, h: (0, 0)),         # ln gamma
            pl.BlockSpec((1, H), lambda b, h: (0, 0)),         # ln beta
        ],
        out_specs=pl.BlockSpec((S, H), lambda b, h: (b, 0)),
        out_shape=jax.ShapeDtypeStruct((M, H), x.dtype),
        scratch_shapes=[pltpu.VMEM((S, H), jnp.float32)],
        compiler_params=pltpu.CompilerParams(
            dimension_semantics=("parallel", "arbitrary"),
            vmem_limit_bytes=_VMEM_LIMIT_BYTES),
        cost_estimate=pl.CostEstimate(flops=flops, transcendentals=transcendentals,
                                      bytes_accessed=bytes_accessed),
    )(x, wqkv, bqkv, wo, bo, mask, gamma, beta)


def ffn_block(x, w1, b1, w2, b2, gamma, beta, eps=1e-12):
    # x: (M, H) bf16; w1: (H, I) bf16; b1: (1, I) f32; w2: (I, H) bf16;
    # b2/gamma/beta: (1, H) f32.
    M, H = x.shape
    I = w1.shape[1]
    tm = min(_TM, M)
    ti = min(_TI, I)
    grid = (pl.cdiv(M, tm), pl.cdiv(I, ti))

    flops = 4 * M * H * I
    transcendentals = M * I
    bytes_accessed = 2 * M * H * 2 + 2 * H * I * 2 + (I + 3 * H) * 4

    return pl.pallas_call(
        functools.partial(_ffn_block_kernel, eps=eps),
        grid=grid,
        in_specs=[
            pl.BlockSpec((tm, H), lambda i, j: (i, 0)),   # x (resident across j)
            pl.BlockSpec((H, ti), lambda i, j: (0, j)),   # w1 chunk (lane-dense)
            pl.BlockSpec((1, ti), lambda i, j: (0, j)),   # b1 chunk
            pl.BlockSpec((ti, H), lambda i, j: (j, 0)),   # w2 chunk
            pl.BlockSpec((1, H), lambda i, j: (0, 0)),    # b2
            pl.BlockSpec((1, H), lambda i, j: (0, 0)),    # ln gamma
            pl.BlockSpec((1, H), lambda i, j: (0, 0)),    # ln beta
        ],
        out_specs=pl.BlockSpec((tm, H), lambda i, j: (i, 0)),
        out_shape=jax.ShapeDtypeStruct((M, H), x.dtype),
        scratch_shapes=[pltpu.VMEM((tm, H), jnp.float32)],
        compiler_params=pltpu.CompilerParams(
            dimension_semantics=("parallel", "arbitrary"),
            vmem_limit_bytes=_VMEM_LIMIT_BYTES),
        cost_estimate=pl.CostEstimate(flops=flops, transcendentals=transcendentals,
                                      bytes_accessed=bytes_accessed),
    )(x, w1, b1, w2, b2, gamma, beta)


def layernorm(x, gamma, beta, eps=1e-12, out_dtype=None):
    # x: (M, H); gamma/beta: (1, H) f32.  Used only for the embedding LayerNorm.
    M, H = x.shape
    out_dtype = x.dtype if out_dtype is None else out_dtype
    tm = min(_TM, M)
    return pl.pallas_call(
        functools.partial(_layernorm_kernel, eps=eps),
        grid=(pl.cdiv(M, tm),),
        in_specs=[pl.BlockSpec((tm, H), lambda i: (i, 0)),
                  pl.BlockSpec((1, H), lambda i: (0, 0)),
                  pl.BlockSpec((1, H), lambda i: (0, 0))],
        out_specs=pl.BlockSpec((tm, H), lambda i: (i, 0)),
        out_shape=jax.ShapeDtypeStruct((M, H), out_dtype),
        compiler_params=pltpu.CompilerParams(
            dimension_semantics=("parallel",),
            vmem_limit_bytes=_VMEM_LIMIT_BYTES),
    )(x, gamma, beta)


def dense(x, w, b, act="none", out_dtype=None):
    # Single-pass tiled matmul (no K loop; K = H <= 1024 for BERT).  Pooler only.
    M, K = x.shape
    N = w.shape[1]
    out_dtype = x.dtype if out_dtype is None else out_dtype
    tm = min(_TM, M)
    tn = min(_TN, N)
    grid = (pl.cdiv(M, tm), pl.cdiv(N, tn))
    return pl.pallas_call(
        functools.partial(_dense_kernel, act=act),
        grid=grid,
        in_specs=[pl.BlockSpec((tm, K), lambda i, j: (i, 0)),
                  pl.BlockSpec((K, tn), lambda i, j: (0, j)),
                  pl.BlockSpec((1, tn), lambda i, j: (0, j))],
        out_specs=pl.BlockSpec((tm, tn), lambda i, j: (i, j)),
        out_shape=jax.ShapeDtypeStruct((M, N), out_dtype),
        compiler_params=pltpu.CompilerParams(
            dimension_semantics=("parallel", "parallel"),
            vmem_limit_bytes=_VMEM_LIMIT_BYTES),
        cost_estimate=pl.CostEstimate(flops=2 * M * N * K, transcendentals=M * N,
                                      bytes_accessed=(M * K + K * N + M * N) * 2),
    )(x, w, b)


# --------------------------------- BERT model -----------------------------------

CFG = dict(
    vocab_size=128,
    type_vocab_size=2,
    max_position_embeddings=16,
    hidden_size=32,
    num_heads=2,
    intermediate_size=64,
    num_layers=2,
)


def _fuse_qkv_head_major(wq, wk, wv, bq, bk, bv, nh):
    """Permute standard (H,H) Q/K/V weights into head-major fused layout ONCE.

    Result: wqkv (nh, H, 3*dh) with per-head columns [q | k | v]; bqkv (nh, 1, 3*dh).
    If loading a HF checkpoint, the same permutation must be applied to its weights.
    """
    H = wq.shape[0]
    dh = H // nh
    w = jnp.concatenate([wq.reshape(H, nh, dh), wk.reshape(H, nh, dh),
                         wv.reshape(H, nh, dh)], axis=-1)          # (H, nh, 3dh)
    w = jnp.transpose(w, (1, 0, 2))                                 # (nh, H, 3dh)
    b = jnp.concatenate([bq.reshape(nh, 1, dh), bk.reshape(nh, 1, dh),
                         bv.reshape(nh, 1, dh)], axis=-1)           # (nh, 1, 3dh)
    return w, b


def init_params(key, cfg):
    # TODO(synk): BertModel.from_pretrained loads real weights; random init here.
    std = 0.02
    H = cfg["hidden_size"]
    I = cfg["intermediate_size"]
    nh = cfg["num_heads"]
    dh = H // nh

    def nrm(k, shape, dtype=COMPUTE_DTYPE):
        return (jax.random.normal(k, shape, dtype=jnp.float32) * std).astype(dtype)

    keys = jax.random.split(key, 8 + cfg["num_layers"])
    params = {
        "word_emb": nrm(keys[0], (cfg["vocab_size"], H), jnp.float32),
        "pos_emb": nrm(keys[1], (cfg["max_position_embeddings"], H), jnp.float32),
        "type_emb": nrm(keys[2], (cfg["type_vocab_size"], H), jnp.float32),
        "emb_ln_g": jnp.ones((1, H), jnp.float32),
        "emb_ln_b": jnp.zeros((1, H), jnp.float32),
        "pooler_w": nrm(keys[3], (H, H)),
        "pooler_b": jnp.zeros((1, H), jnp.float32),
        "layers": [],
    }
    for li in range(cfg["num_layers"]):
        lk = jax.random.split(keys[8 + li], 6)
        wq, wk, wv = nrm(lk[0], (H, H)), nrm(lk[1], (H, H)), nrm(lk[2], (H, H))
        bq = bk = bv = jnp.zeros((H,), jnp.float32)
        wqkv, bqkv = _fuse_qkv_head_major(wq, wk, wv, bq, bk, bv, nh)
        params["layers"].append({
            "wqkv": wqkv,                                    # (nh, H, 3dh) head-major
            "bqkv": bqkv,                                    # (nh, 1, 3dh)
            "wo": nrm(lk[3], (H, H)).reshape(nh, dh, H),     # (nh, dh, H) head-major
            "bo": jnp.zeros((1, H), jnp.float32),
            "ln1_g": jnp.ones((1, H), jnp.float32),
            "ln1_b": jnp.zeros((1, H), jnp.float32),
            "w1": nrm(lk[4], (H, I)), "b1": jnp.zeros((1, I), jnp.float32),
            "w2": nrm(lk[5], (I, H)), "b2": jnp.zeros((1, H), jnp.float32),
            "ln2_g": jnp.ones((1, H), jnp.float32),
            "ln2_b": jnp.zeros((1, H), jnp.float32),
        })
    return params


def bert_encoder_forward(params, input_ids, attention_mask, token_type_ids, cfg):
    """Returns pooler_output, shape (B, H) — same semantics as BertEncoder.forward."""
    B, S = input_ids.shape
    H = cfg["hidden_size"]

    # --- embeddings (gather is glue; LayerNorm is Pallas) ---
    emb = (jnp.take(params["word_emb"], input_ids, axis=0)
           + params["pos_emb"][None, :S, :]
           + jnp.take(params["type_emb"], token_type_ids, axis=0))      # (B, S, H) f32
    x = layernorm(emb.reshape(B * S, H), params["emb_ln_g"], params["emb_ln_b"],
                  out_dtype=COMPUTE_DTYPE)                              # (B*S, H) bf16

    # --- shared additive attention mask: (B, 1, S); no per-head repeat ---
    ext_mask = ((1.0 - attention_mask.astype(jnp.float32)) * -10000.0).reshape(B, 1, S)

    # --- transformer layers: 2 fused pallas_calls per layer ---
    for lp in params["layers"]:
        x = attention_block(x, lp["wqkv"], lp["bqkv"], lp["wo"], lp["bo"],
                            ext_mask, lp["ln1_g"], lp["ln1_b"])         # (B*S, H)
        x = ffn_block(x, lp["w1"], lp["b1"], lp["w2"], lp["b2"],
                      lp["ln2_g"], lp["ln2_b"])                         # (B*S, H)

    # --- pooler: tanh(W @ hidden[:, 0] + b) ---
    first_tok = x.reshape(B, S, H)[:, 0, :]                             # (B, H)
    pooled = dense(first_tok, params["pooler_w"], params["pooler_b"],
                   act="tanh", out_dtype=jnp.float32)
    return pooled                                                       # (B, H) f32


# ------------------------------------ main ---------------------------------------

if __name__ == "__main__":
    key = jax.random.PRNGKey(0)
    pkey, ikey = jax.random.split(key)

    B, S = 2, 8
    cfg = CFG
    params = init_params(pkey, cfg)

    input_ids = jax.random.randint(ikey, (B, S), 0, cfg["vocab_size"], dtype=jnp.int32)
    attention_mask = jnp.ones((B, S), dtype=jnp.int32).at[1, 6:].set(0)  # pad tail of batch 1
    token_type_ids = jnp.zeros((B, S), dtype=jnp.int32)

    fwd = jax.jit(functools.partial(bert_encoder_forward, cfg=cfg))
    pooler_output = fwd(params, input_ids, attention_mask, token_type_ids)
    pooler_output = jax.block_until_ready(pooler_output)

    assert pooler_output.shape == (B, cfg["hidden_size"])
    assert bool(jnp.all(jnp.isfinite(pooler_output)))
    print("KERNEL_OK")
</pallas_src>

<mosaic_0001>
module attributes {stable_mosaic.version = 11 : i64} {
  func.func @_layernorm_kernel(%arg0: i32, %arg1: memref<16x32xf32, #tpu.memory_space<vmem>>, %arg2: memref<1x32xf32, #tpu.memory_space<vmem>>, %arg3: memref<1x32xf32, #tpu.memory_space<vmem>>, %arg4: memref<16x32xbf16, #tpu.memory_space<vmem>>) attributes {dimension_semantics = [#tpu.dimension_semantics<parallel>], iteration_bounds = array<i64: 1>, scalar_prefetch = 0 : i64, scratch_operands = 0 : i64, tpu.core_type = #tpu.core_type<tc>, window_params = [{transform_indices = @transform_0, window_bounds = array<i64: 16, 32>}, {pipeline_mode = #tpu.pipeline_mode<synchronous>, transform_indices = @transform_1, window_bounds = array<i64: 1, 32>}, {pipeline_mode = #tpu.pipeline_mode<synchronous>, transform_indices = @transform_2, window_bounds = array<i64: 1, 32>}, {transform_indices = @transform_3, window_bounds = array<i64: 16, 32>}]} {
    %c0 = arith.constant 0 : index
    %c0_0 = arith.constant 0 : index
    %0 = vector.load %arg1[%c0, %c0_0] : memref<16x32xf32, #tpu.memory_space<vmem>>, vector<16x32xf32>
    %cst = arith.constant dense<0.000000e+00> : vector<16xf32>
    %1 = vector.multi_reduction <add>, %0, %cst [1] : vector<16x32xf32> to vector<16xf32>
    %2 = vector.shape_cast %1 : vector<16xf32> to vector<16x1xf32>
    %cst_1 = arith.constant 3.200000e+01 : f32
    %3 = vector.broadcast %cst_1 : f32 to vector<16x1xf32>
    %4 = arith.divf %2, %3 : vector<16x1xf32>
    %5 = vector.broadcast %4 : vector<16x1xf32> to vector<16x32xf32>
    %6 = arith.subf %0, %5 : vector<16x32xf32>
    %7 = arith.mulf %6, %6 : vector<16x32xf32>
    %cst_2 = arith.constant dense<0.000000e+00> : vector<16xf32>
    %8 = vector.multi_reduction <add>, %7, %cst_2 [1] : vector<16x32xf32> to vector<16xf32>
    %9 = vector.shape_cast %8 : vector<16xf32> to vector<16x1xf32>
    %cst_3 = arith.constant 3.200000e+01 : f32
    %10 = vector.broadcast %cst_3 : f32 to vector<16x1xf32>
    %11 = arith.divf %9, %10 : vector<16x1xf32>
    %cst_4 = arith.constant 9.99999996E-13 : f32
    %12 = vector.broadcast %cst_4 : f32 to vector<16x1xf32>
    %13 = arith.addf %11, %12 : vector<16x1xf32>
    %14 = math.rsqrt %13 : vector<16x1xf32>
    %15 = vector.broadcast %14 : vector<16x1xf32> to vector<16x32xf32>
    %16 = arith.mulf %6, %15 : vector<16x32xf32>
    %c0_5 = arith.constant 0 : index
    %c0_6 = arith.constant 0 : index
    %17 = vector.load %arg2[%c0_5, %c0_6] : memref<1x32xf32, #tpu.memory_space<vmem>>, vector<1x32xf32>
    %18 = vector.broadcast %17 : vector<1x32xf32> to vector<16x32xf32>
    %19 = arith.mulf %16, %18 : vector<16x32xf32>
    %c0_7 = arith.constant 0 : index
    %c0_8 = arith.constant 0 : index
    %20 = vector.load %arg3[%c0_7, %c0_8] : memref<1x32xf32, #tpu.memory_space<vmem>>, vector<1x32xf32>
    %21 = vector.broadcast %20 : vector<1x32xf32> to vector<16x32xf32>
    %22 = arith.addf %19, %21 : vector<16x32xf32>
    %23 = arith.truncf %22 : vector<16x32xf32> to vector<16x32xbf16>
    %c0_9 = arith.constant 0 : index
    %c0_10 = arith.constant 0 : index
    %24 = vector.load %arg4[%c0_9, %c0_10] : memref<16x32xbf16, #tpu.memory_space<vmem>>, vector<16x32xbf16>
    tpu.vector_store %arg4[%c0_9, %c0_10], %23 {strides = array<i32>} : memref<16x32xbf16, #tpu.memory_space<vmem>>, vector<16x32xbf16>,
    return
  }
  func.func @transform_0(%arg0: i32) -> (i32, i32) {
    %c0_i32 = arith.constant 0 : i32
    %c0_i32_0 = arith.constant 0 : i32
    return %arg0, %c0_i32 : i32, i32
  }
  func.func @transform_1(%arg0: i32) -> (i32, i32) {
    %c0_i32 = arith.constant 0 : i32
    %c0_i32_0 = arith.constant 0 : i32
    %c0_i32_1 = arith.constant 0 : i32
    return %c0_i32, %c0_i32_0 : i32, i32
  }
  func.func @transform_2(%arg0: i32) -> (i32, i32) {
    %c0_i32 = arith.constant 0 : i32
    %c0_i32_0 = arith.constant 0 : i32
    %c0_i32_1 = arith.constant 0 : i32
    return %c0_i32, %c0_i32_0 : i32, i32
  }
  func.func @transform_3(%arg0: i32) -> (i32, i32) {
    %c0_i32 = arith.constant 0 : i32
    %c0_i32_0 = arith.constant 0 : i32
    return %arg0, %c0_i32 : i32, i32
  }
}

module attributes {stable_mosaic.version = 11 : i64} {
  func.func @_attn_block_kernel(%arg0: i32, %arg1: i32, %arg2: memref<8x32xbf16, #tpu.memory_space<vmem>>, %arg3: memref<1x32x48xbf16, #tpu.memory_space<vmem>>, %arg4: memref<1x1x48xf32, #tpu.memory_space<vmem>>, %arg5: memref<1x16x32xbf16, #tpu.memory_space<vmem>>, %arg6: memref<1x32xf32, #tpu.memory_space<vmem>>, %arg7: memref<1x1x8xf32, #tpu.memory_space<vmem>>, %arg8: memref<1x32xf32, #tpu.memory_space<vmem>>, %arg9: memref<1x32xf32, #tpu.memory_space<vmem>>, %arg10: memref<8x32xbf16, #tpu.memory_space<vmem>>, %arg11: memref<8x32xf32, #tpu.memory_space<vmem>>) attributes {dimension_semantics = [#tpu.dimension_semantics<parallel>, #tpu.dimension_semantics<arbitrary>], iteration_bounds = array<i64: 2, 2>, scalar_prefetch = 0 : i64, scratch_operands = 1 : i64, tpu.core_type = #tpu.core_type<tc>, window_params = [{transform_indices = @transform_0, window_bounds = array<i64: 8, 32>}, {transform_indices = @transform_1, window_bounds = array<i64: 1, 32, 48>}, {transform_indices = @transform_2, window_bounds = array<i64: 1, 1, 48>}, {transform_indices = @transform_3, window_bounds = array<i64: 1, 16, 32>}, {pipeline_mode = #tpu.pipeline_mode<synchronous>, transform_indices = @transform_4, window_bounds = array<i64: 1, 32>}, {transform_indices = @transform_5, window_bounds = array<i64: 1, 1, 8>}, {pipeline_mode = #tpu.pipeline_mode<synchronous>, transform_indices = @transform_6, window_bounds = array<i64: 1, 32>}, {pipeline_mode = #tpu.pipeline_mode<synchronous>, transform_indices = @transform_7, window_bounds = array<i64: 1, 32>}, {transform_indices = @transform_8, window_bounds = array<i64: 8, 32>}]} {
    %c0_i32 = arith.constant 0 : i32
    %0 = arith.cmpi eq, %arg1, %c0_i32 : i32
    %1 = arith.extui %0 : i1 to i32
    %c0_i32_0 = arith.constant 0 : i32
    %2 = arith.cmpi ne, %1, %c0_i32_0 : i32
    scf.if %2 {
      %cst_25 = arith.constant 0.000000e+00 : f32
      %44 = vector.broadcast %cst_25 : f32 to vector<8x32xf32>
      %c0_26 = arith.constant 0 : index
      %c0_27 = arith.constant 0 : index
      %45 = vector.load %arg11[%c0_26, %c0_27] : memref<8x32xf32, #tpu.memory_space<vmem>>, vector<8x32xf32>
      tpu.vector_store %arg11[%c0_26, %c0_27], %44 {strides = array<i32>} : memref<8x32xf32, #tpu.memory_space<vmem>>, vector<8x32xf32>,
    } else {
    }
    %c0 = arith.constant 0 : index
    %c0_1 = arith.constant 0 : index
    %3 = vector.load %arg2[%c0, %c0_1] : memref<8x32xbf16, #tpu.memory_space<vmem>>, vector<8x32xbf16>
    %c0_2 = arith.constant 0 : index
    %c0_3 = arith.constant 0 : index
    %c0_4 = arith.constant 0 : index
    %4 = vector.load %arg3[%c0_2, %c0_3, %c0_4] : memref<1x32x48xbf16, #tpu.memory_space<vmem>>, vector<1x32x48xbf16>
    %5 = vector.shape_cast %4 : vector<1x32x48xbf16> to vector<32x48xbf16>
    %cst = arith.constant dense<0.000000e+00> : vector<8x48xf32>
    %6 = tpu.matmul %3, %5, %cst {dimension_numbers = #tpu.dot_dimension_numbers<[1], [0], [0], [1], [0, 0, 1, 1], [], []>} : vector<8x32xbf16>, vector<32x48xbf16>, vector<8x48xf32> -> vector<8x48xf32>
    %c0_5 = arith.constant 0 : index
    %c0_6 = arith.constant 0 : index
    %c0_7 = arith.constant 0 : index
    %7 = vector.load %arg4[%c0_5, %c0_6, %c0_7] : memref<1x1x48xf32, #tpu.memory_space<vmem>>, vector<1x1x48xf32>
    %8 = vector.shape_cast %7 : vector<1x1x48xf32> to vector<1x48xf32>
    %9 = vector.broadcast %8 : vector<1x48xf32> to vector<8x48xf32>
    %10 = arith.addf %6, %9 : vector<8x48xf32>
    %11 = arith.truncf %10 : vector<8x48xf32> to vector<8x48xbf16>
    %12 = vector.extract_strided_slice %11 {offsets = [0, 0], sizes = [8, 16], strides = [1, 1]} : vector<8x48xbf16> to vector<8x16xbf16>
    %13 = vector.extract_strided_slice %11 {offsets = [0, 16], sizes = [8, 16], strides = [1, 1]} : vector<8x48xbf16> to vector<8x16xbf16>
    %14 = vector.extract_strided_slice %11 {offsets = [0, 32], sizes = [8, 16], strides = [1, 1]} : vector<8x48xbf16> to vector<8x16xbf16>
    %cst_8 = arith.constant dense<0.000000e+00> : vector<8x8xf32>
    %15 = tpu.matmul %12, %13, %cst_8 {dimension_numbers = #tpu.dot_dimension_numbers<[1], [1], [0], [0], [0, 0, 1, 0], [], []>} : vector<8x16xbf16>, vector<8x16xbf16>, vector<8x8xf32> -> vector<8x8xf32>
    %cst_9 = arith.constant 2.500000e-01 : f32
    %16 = vector.broadcast %cst_9 : f32 to vector<8x8xf32>
    %17 = arith.mulf %15, %16 : vector<8x8xf32>
    %c0_10 = arith.constant 0 : index
    %c0_11 = arith.constant 0 : index
    %c0_12 = arith.constant 0 : index
    %18 = vector.load %arg7[%c0_10, %c0_11, %c0_12] : memref<1x1x8xf32, #tpu.memory_space<vmem>>, vector<1x1x8xf32>
    %19 = vector.shape_cast %18 : vector<1x1x8xf32> to vector<1x8xf32>
    %20 = vector.broadcast %19 : vector<1x8xf32> to vector<8x8xf32>
    %21 = arith.addf %17, %20 : vector<8x8xf32>
    %cst_13 = arith.constant dense<0xFF800000> : vector<8xf32>
    %22 = vector.multi_reduction <maximumf>, %21, %cst_13 [1] : vector<8x8xf32> to vector<8xf32>
    %23 = vector.shape_cast %22 : vector<8xf32> to vector<8x1xf32>
    %24 = vector.broadcast %23 : vector<8x1xf32> to vector<8x8xf32>
    %25 = arith.subf %21, %24 : vector<8x8xf32>
    %26 = math.exp %25 : vector<8x8xf32>
    %cst_14 = arith.constant dense<0.000000e+00> : vector<8xf32>
    %27 = vector.multi_reduction <add>, %26, %cst_14 [1] : vector<8x8xf32> to vector<8xf32>
    %28 = vector.shape_cast %27 : vector<8xf32> to vector<8x1xf32>
    %29 = arith.truncf %26 : vector<8x8xf32> to vector<8x8xbf16>
    %cst_15 = arith.constant dense<0.000000e+00> : vector<8x16xf32>
    %30 = tpu.matmul %29, %14, %cst_15 {dimension_numbers = #tpu.dot_dimension_numbers<[1], [0], [0], [1], [0, 0, 1, 1], [], []>} : vector<8x8xbf16>, vector<8x16xbf16>, vector<8x16xf32> -> vector<8x16xf32>
    %31 = tpu.reciprocal %28 {approx = true} : vector<8x1xf32> -> vector<8x1xf32>
    %32 = vector.broadcast %31 : vector<8x1xf32> to vector<8x16xf32>
    %33 = arith.mulf %30, %32 : vector<8x16xf32>
    %c0_16 = arith.constant 0 : index
    %c0_17 = arith.constant 0 : index
    %34 = vector.load %arg11[%c0_16, %c0_17] : memref<8x32xf32, #tpu.memory_space<vmem>>, vector<8x32xf32>
    %35 = arith.truncf %33 : vector<8x16xf32> to vector<8x16xbf16>
    %c0_18 = arith.constant 0 : index
    %c0_19 = arith.constant 0 : index
    %c0_20 = arith.constant 0 : index
    %36 = vector.load %arg5[%c0_18, %c0_19, %c0_20] : memref<1x16x32xbf16, #tpu.memory_space<vmem>>, vector<1x16x32xbf16>
    %37 = vector.shape_cast %36 : vector<1x16x32xbf16> to vector<16x32xbf16>
    %cst_21 = arith.constant dense<0.000000e+00> : vector<8x32xf32>
    %38 = tpu.matmul %35, %37, %cst_21 {dimension_numbers = #tpu.dot_dimension_numbers<[1], [0], [0], [1], [0, 0, 1, 1], [], []>} : vector<8x16xbf16>, vector<16x32xbf16>, vector<8x32xf32> -> vector<8x32xf32>
    %39 = arith.addf %34, %38 : vector<8x32xf32>
    %c0_22 = arith.constant 0 : index
    %c0_23 = arith.constant 0 : index
    %40 = vector.load %arg11[%c0_22, %c0_23] : memref<8x32xf32, #tpu.memory_space<vmem>>, vector<8x32xf32>
    tpu.vector_store %arg11[%c0_22, %c0_23], %39 {strides = array<i32>} : memref<8x32xf32, #tpu.memory_space<vmem>>, vector<8x32xf32>,
    %c1_i32 = arith.constant 1 : i32
    %41 = arith.cmpi eq, %arg1, %c1_i32 : i32
    %42 = arith.extui %41 : i1 to i32
    %c0_i32_24 = arith.constant 0 : i32
    %43 = arith.cmpi ne, %42, %c0_i32_24 : i32
    scf.if %43 {
      %c0_25 = arith.constant 0 : index
      %c0_26 = arith.constant 0 : index
      %44 = vector.load %arg11[%c0_25, %c0_26] : memref<8x32xf32, #tpu.memory_space<vmem>>, vector<8x32xf32>
      %c0_27 = arith.constant 0 : index
      %c0_28 = arith.constant 0 : index
      %45 = vector.load %arg6[%c0_27, %c0_28] : memref<1x32xf32, #tpu.memory_space<vmem>>, vector<1x32xf32>
      %46 = vector.broadcast %45 : vector<1x32xf32> to vector<8x32xf32>
      %47 = arith.addf %44, %46 : vector<8x32xf32>
      %c0_29 = arith.constant 0 : index
      %c0_30 = arith.constant 0 : index
      %48 = vector.load %arg2[%c0_29, %c0_30] : memref<8x32xbf16, #tpu.memory_space<vmem>>, vector<8x32xbf16>
      %49 = arith.extf %48 : vector<8x32xbf16> to vector<8x32xf32>
      %50 = arith.addf %47, %49 : vector<8x32xf32>
      %cst_31 = arith.constant dense<0.000000e+00> : vector<8xf32>
      %51 = vector.multi_reduction <add>, %50, %cst_31 [1] : vector<8x32xf32> to vector<8xf32>
      %52 = vector.shape_cast %51 : vector<8xf32> to vector<8x1xf32>
      %cst_32 = arith.constant 3.200000e+01 : f32
      %53 = vector.broadcast %cst_32 : f32 to vector<8x1xf32>
      %54 = arith.divf %52, %53 : vector<8x1xf32>
      %55 = vector.broadcast %54 : vector<8x1xf32> to vector<8x32xf32>
      %56 = arith.subf %50, %55 : vector<8x32xf32>
      %57 = arith.mulf %56, %56 : vector<8x32xf32>
      %cst_33 = arith.constant dense<0.000000e+00> : vector<8xf32>
      %58 = vector.multi_reduction <add>, %57, %cst_33 [1] : vector<8x32xf32> to vector<8xf32>
      %59 = vector.shape_cast %58 : vector<8xf32> to vector<8x1xf32>
      %cst_34 = arith.constant 3.200000e+01 : f32
      %60 = vector.broadcast %cst_34 : f32 to vector<8x1xf32>
      %61 = arith.divf %59, %60 : vector<8x1xf32>
      %cst_35 = arith.constant 9.99999996E-13 : f32
      %62 = vector.broadcast %cst_35 : f32 to vector<8x1xf32>
      %63 = arith.addf %61, %62 : vector<8x1xf32>
      %64 = math.rsqrt %63 : vector<8x1xf32>
      %65 = vector.broadcast %64 : vector<8x1xf32> to vector<8x32xf32>
      %66 = arith.mulf %56, %65 : vector<8x32xf32>
      %c0_36 = arith.constant 0 : index
      %c0_37 = arith.constant 0 : index
      %67 = vector.load %arg8[%c0_36, %c0_37] : memref<1x32xf32, #tpu.memory_space<vmem>>, vector<1x32xf32>
      %68 = vector.broadcast %67 : vector<1x32xf32> to vector<8x32xf32>
      %69 = arith.mulf %66, %68 : vector<8x32xf32>
      %c0_38 = arith.constant 0 : index
      %c0_39 = arith.constant 0 : index
      %70 = vector.load %arg9[%c0_38, %c0_39] : memref<1x32xf32, #tpu.memory_space<vmem>>, vector<1x32xf32>
      %71 = vector.broadcast %70 : vector<1x32xf32> to vector<8x32xf32>
      %72 = arith.addf %69, %71 : vector<8x32xf32>
      %73 = arith.truncf %72 : vector<8x32xf32> to vector<8x32xbf16>
      %c0_40 = arith.constant 0 : index
      %c0_41 = arith.constant 0 : index
      %74 = vector.load %arg10[%c0_40, %c0_41] : memref<8x32xbf16, #tpu.memory_space<vmem>>, vector<8x32xbf16>
      tpu.vector_store %arg10[%c0_40, %c0_41], %73 {strides = array<i32>} : memref<8x32xbf16, #tpu.memory_space<vmem>>, vector<8x32xbf16>,
    } else {
    }
    return
  }
  func.func @transform_0(%arg0: i32, %arg1: i32) -> (i32, i32) {
    %c0_i32 = arith.constant 0 : i32
    %c0_i32_0 = arith.constant 0 : i32
    return %arg0, %c0_i32 : i32, i32
  }
  func.func @transform_1(%arg0: i32, %arg1: i32) -> (i32, i32, i32) {
    %c0_i32 = arith.constant 0 : i32
    %c0_i32_0 = arith.constant 0 : i32
    %c0_i32_1 = arith.constant 0 : i32
    return %arg1, %c0_i32, %c0_i32_0 : i32, i32, i32
  }
  func.func @transform_2(%arg0: i32, %arg1: i32) -> (i32, i32, i32) {
    %c0_i32 = arith.constant 0 : i32
    %c0_i32_0 = arith.constant 0 : i32
    %c0_i32_1 = arith.constant 0 : i32
    return %arg1, %c0_i32, %c0_i32_0 : i32, i32, i32
  }
  func.func @transform_3(%arg0: i32, %arg1: i32) -> (i32, i32, i32) {
    %c0_i32 = arith.constant 0 : i32
    %c0_i32_0 = arith.constant 0 : i32
    %c0_i32_1 = arith.constant 0 : i32
    return %arg1, %c0_i32, %c0_i32_0 : i32, i32, i32
  }
  func.func @transform_4(%arg0: i32, %arg1: i32) -> (i32, i32) {
    %c0_i32 = arith.constant 0 : i32
    %c0_i32_0 = arith.constant 0 : i32
    %c0_i32_1 = arith.constant 0 : i32
    return %c0_i32, %c0_i32_0 : i32, i32
  }
  func.func @transform_5(%arg0: i32, %arg1: i32) -> (i32, i32, i32) {
    %c0_i32 = arith.constant 0 : i32
    %c0_i32_0 = arith.constant 0 : i32
    %c0_i32_1 = arith.constant 0 : i32
    return %arg0, %c0_i32, %c0_i32_0 : i32, i32, i32
  }
  func.func @transform_6(%arg0: i32, %arg1: i32) -> (i32, i32) {
    %c0_i32 = arith.constant 0 : i32
    %c0_i32_0 = arith.constant 0 : i32
    %c0_i32_1 = arith.constant 0 : i32
    return %c0_i32, %c0_i32_0 : i32, i32
  }
  func.func @transform_7(%arg0: i32, %arg1: i32) -> (i32, i32) {
    %c0_i32 = arith.constant 0 : i32
    %c0_i32_0 = arith.constant 0 : i32
    %c0_i32_1 = arith.constant 0 : i32
    return %c0_i32, %c0_i32_0 : i32, i32
  }
  func.func @transform_8(%arg0: i32, %arg1: i32) -> (i32, i32) {
    %c0_i32 = arith.constant 0 : i32
    %c0_i32_0 = arith.constant 0 : i32
    return %arg0, %c0_i32 : i32, i32
  }
}

module attributes {stable_mosaic.version = 11 : i64} {
  func.func @_dense_kernel(%arg0: i32, %arg1: i32, %arg2: memref<2x32xbf16, #tpu.memory_space<vmem>>, %arg3: memref<32x32xbf16, #tpu.memory_space<vmem>>, %arg4: memref<1x32xf32, #tpu.memory_space<vmem>>, %arg5: memref<2x32xf32, #tpu.memory_space<vmem>>) attributes {dimension_semantics = [#tpu.dimension_semantics<parallel>, #tpu.dimension_semantics<parallel>], iteration_bounds = array<i64: 1, 1>, scalar_prefetch = 0 : i64, scratch_operands = 0 : i64, tpu.core_type = #tpu.core_type<tc>, window_params = [{transform_indices = @transform_0, window_bounds = array<i64: 2, 32>}, {transform_indices = @transform_1, window_bounds = array<i64: 32, 32>}, {transform_indices = @transform_2, window_bounds = array<i64: 1, 32>}, {transform_indices = @transform_3, window_bounds = array<i64: 2, 32>}]} {
    %c0 = arith.constant 0 : index
    %c0_0 = arith.constant 0 : index
    %0 = vector.load %arg2[%c0, %c0_0] : memref<2x32xbf16, #tpu.memory_space<vmem>>, vector<2x32xbf16>
    %c0_1 = arith.constant 0 : index
    %c0_2 = arith.constant 0 : index
    %1 = vector.load %arg3[%c0_1, %c0_2] : memref<32x32xbf16, #tpu.memory_space<vmem>>, vector<32x32xbf16>
    %cst = arith.constant dense<0.000000e+00> : vector<2x32xf32>
    %2 = tpu.matmul %0, %1, %cst {dimension_numbers = #tpu.dot_dimension_numbers<[1], [0], [0], [1], [0, 0, 1, 1], [], []>} : vector<2x32xbf16>, vector<32x32xbf16>, vector<2x32xf32> -> vector<2x32xf32>
    %c0_3 = arith.constant 0 : index
    %c0_4 = arith.constant 0 : index
    %3 = vector.load %arg4[%c0_3, %c0_4] : memref<1x32xf32, #tpu.memory_space<vmem>>, vector<1x32xf32>
    %4 = vector.broadcast %3 : vector<1x32xf32> to vector<2x32xf32>
    %5 = arith.addf %2, %4 : vector<2x32xf32>
    %6 = math.tanh %5 : vector<2x32xf32>
    %c0_5 = arith.constant 0 : index
    %c0_6 = arith.constant 0 : index
    %7 = vector.load %arg5[%c0_5, %c0_6] : memref<2x32xf32, #tpu.memory_space<vmem>>, vector<2x32xf32>
    tpu.vector_store %arg5[%c0_5, %c0_6], %6 {strides = array<i32>} : memref<2x32xf32, #tpu.memory_space<vmem>>, vector<2x32xf32>,
    return
  }
  func.func @transform_0(%arg0: i32, %arg1: i32) -> (i32, i32) {
    %c0_i32 = arith.constant 0 : i32
    %c0_i32_0 = arith.constant 0 : i32
    return %arg0, %c0_i32 : i32, i32
  }
  func.func @transform_1(%arg0: i32, %arg1: i32) -> (i32, i32) {
    %c0_i32 = arith.constant 0 : i32
    %c0_i32_0 = arith.constant 0 : i32
    return %c0_i32, %arg1 : i32, i32
  }
  func.func @transform_2(%arg0: i32, %arg1: i32) -> (i32, i32) {
    %c0_i32 = arith.constant 0 : i32
    %c0_i32_0 = arith.constant 0 : i32
    return %c0_i32, %arg1 : i32, i32
  }
  func.func @transform_3(%arg0: i32, %arg1: i32) -> (i32, i32) {
    %c0_i32 = arith.constant 0 : i32
    return %arg0, %arg1 : i32, i32
  }
}

module attributes {stable_mosaic.version = 11 : i64} {
  func.func @_ffn_block_kernel(%arg0: i32, %arg1: i32, %arg2: memref<16x32xbf16, #tpu.memory_space<vmem>>, %arg3: memref<32x64xbf16, #tpu.memory_space<vmem>>, %arg4: memref<1x64xf32, #tpu.memory_space<vmem>>, %arg5: memref<64x32xbf16, #tpu.memory_space<vmem>>, %arg6: memref<1x32xf32, #tpu.memory_space<vmem>>, %arg7: memref<1x32xf32, #tpu.memory_space<vmem>>, %arg8: memref<1x32xf32, #tpu.memory_space<vmem>>, %arg9: memref<16x32xbf16, #tpu.memory_space<vmem>>, %arg10: memref<16x32xf32, #tpu.memory_space<vmem>>) attributes {dimension_semantics = [#tpu.dimension_semantics<parallel>, #tpu.dimension_semantics<arbitrary>], iteration_bounds = array<i64: 1, 1>, scalar_prefetch = 0 : i64, scratch_operands = 1 : i64, tpu.core_type = #tpu.core_type<tc>, window_params = [{transform_indices = @transform_0, window_bounds = array<i64: 16, 32>}, {transform_indices = @transform_1, window_bounds = array<i64: 32, 64>}, {transform_indices = @transform_2, window_bounds = array<i64: 1, 64>}, {transform_indices = @transform_3, window_bounds = array<i64: 64, 32>}, {pipeline_mode = #tpu.pipeline_mode<synchronous>, transform_indices = @transform_4, window_bounds = array<i64: 1, 32>}, {pipeline_mode = #tpu.pipeline_mode<synchronous>, transform_indices = @transform_5, window_bounds = array<i64: 1, 32>}, {pipeline_mode = #tpu.pipeline_mode<synchronous>, transform_indices = @transform_6, window_bounds = array<i64: 1, 32>}, {transform_indices = @transform_7, window_bounds = array<i64: 16, 32>}]} {
    %c0_i32 = arith.constant 0 : i32
    %0 = arith.cmpi eq, %arg1, %c0_i32 : i32
    %1 = arith.extui %0 : i1 to i32
    %c0_i32_0 = arith.constant 0 : i32
    %2 = arith.cmpi ne, %1, %c0_i32_0 : i32
    scf.if %2 {
      %cst_19 = arith.constant 0.000000e+00 : f32
      %31 = vector.broadcast %cst_19 : f32 to vector<16x32xf32>
      %c0_20 = arith.constant 0 : index
      %c0_21 = arith.constant 0 : index
      %32 = vector.load %arg10[%c0_20, %c0_21] : memref<16x32xf32, #tpu.memory_space<vmem>>, vector<16x32xf32>
      tpu.vector_store %arg10[%c0_20, %c0_21], %31 {strides = array<i32>} : memref<16x32xf32, #tpu.memory_space<vmem>>, vector<16x32xf32>,
    } else {
    }
    %c0 = arith.constant 0 : index
    %c0_1 = arith.constant 0 : index
    %3 = vector.load %arg2[%c0, %c0_1] : memref<16x32xbf16, #tpu.memory_space<vmem>>, vector<16x32xbf16>
    %c0_2 = arith.constant 0 : index
    %c0_3 = arith.constant 0 : index
    %4 = vector.load %arg3[%c0_2, %c0_3] : memref<32x64xbf16, #tpu.memory_space<vmem>>, vector<32x64xbf16>
    %cst = arith.constant dense<0.000000e+00> : vector<16x64xf32>
    %5 = tpu.matmul %3, %4, %cst {dimension_numbers = #tpu.dot_dimension_numbers<[1], [0], [0], [1], [0, 0, 1, 1], [], []>} : vector<16x32xbf16>, vector<32x64xbf16>, vector<16x64xf32> -> vector<16x64xf32>
    %c0_4 = arith.constant 0 : index
    %c0_5 = arith.constant 0 : index
    %6 = vector.load %arg4[%c0_4, %c0_5] : memref<1x64xf32, #tpu.memory_space<vmem>>, vector<1x64xf32>
    %7 = vector.broadcast %6 : vector<1x64xf32> to vector<16x64xf32>
    %8 = arith.addf %5, %7 : vector<16x64xf32>
    %cst_6 = arith.constant 5.000000e-01 : f32
    %9 = vector.broadcast %cst_6 : f32 to vector<16x64xf32>
    %10 = arith.mulf %9, %8 : vector<16x64xf32>
    %cst_7 = arith.constant 4.471500e-02 : f32
    %11 = vector.broadcast %cst_7 : f32 to vector<16x64xf32>
    %12 = arith.mulf %11, %8 : vector<16x64xf32>
    %13 = arith.mulf %12, %8 : vector<16x64xf32>
    %14 = arith.mulf %13, %8 : vector<16x64xf32>
    %15 = arith.addf %8, %14 : vector<16x64xf32>
    %cst_8 = arith.constant 0.797884583 : f32
    %16 = vector.broadcast %cst_8 : f32 to vector<16x64xf32>
    %17 = arith.mulf %16, %15 : vector<16x64xf32>
    %18 = math.tanh %17 : vector<16x64xf32>
    %cst_9 = arith.constant 1.000000e+00 : f32
    %19 = vector.broadcast %cst_9 : f32 to vector<16x64xf32>
    %20 = arith.addf %19, %18 : vector<16x64xf32>
    %21 = arith.mulf %10, %20 : vector<16x64xf32>
    %c0_10 = arith.constant 0 : index
    %c0_11 = arith.constant 0 : index
    %22 = vector.load %arg10[%c0_10, %c0_11] : memref<16x32xf32, #tpu.memory_space<vmem>>, vector<16x32xf32>
    %23 = arith.truncf %21 : vector<16x64xf32> to vector<16x64xbf16>
    %c0_12 = arith.constant 0 : index
    %c0_13 = arith.constant 0 : index
    %24 = vector.load %arg5[%c0_12, %c0_13] : memref<64x32xbf16, #tpu.memory_space<vmem>>, vector<64x32xbf16>
    %cst_14 = arith.constant dense<0.000000e+00> : vector<16x32xf32>
    %25 = tpu.matmul %23, %24, %cst_14 {dimension_numbers = #tpu.dot_dimension_numbers<[1], [0], [0], [1], [0, 0, 1, 1], [], []>} : vector<16x64xbf16>, vector<64x32xbf16>, vector<16x32xf32> -> vector<16x32xf32>
    %26 = arith.addf %22, %25 : vector<16x32xf32>
    %c0_15 = arith.constant 0 : index
    %c0_16 = arith.constant 0 : index
    %27 = vector.load %arg10[%c0_15, %c0_16] : memref<16x32xf32, #tpu.memory_space<vmem>>, vector<16x32xf32>
    tpu.vector_store %arg10[%c0_15, %c0_16], %26 {strides = array<i32>} : memref<16x32xf32, #tpu.memory_space<vmem>>, vector<16x32xf32>,
    %c0_i32_17 = arith.constant 0 : i32
    %28 = arith.cmpi eq, %arg1, %c0_i32_17 : i32
    %29 = arith.extui %28 : i1 to i32
    %c0_i32_18 = arith.constant 0 : i32
    %30 = arith.cmpi ne, %29, %c0_i32_18 : i32
    scf.if %30 {
      %c0_19 = arith.constant 0 : index
      %c0_20 = arith.constant 0 : index
      %31 = vector.load %arg10[%c0_19, %c0_20] : memref<16x32xf32, #tpu.memory_space<vmem>>, vector<16x32xf32>
      %c0_21 = arith.constant 0 : index
      %c0_22 = arith.constant 0 : index
      %32 = vector.load %arg6[%c0_21, %c0_22] : memref<1x32xf32, #tpu.memory_space<vmem>>, vector<1x32xf32>
      %33 = vector.broadcast %32 : vector<1x32xf32> to vector<16x32xf32>
      %34 = arith.addf %31, %33 : vector<16x32xf32>
      %c0_23 = arith.constant 0 : index
      %c0_24 = arith.constant 0 : index
      %35 = vector.load %arg2[%c0_23, %c0_24] : memref<16x32xbf16, #tpu.memory_space<vmem>>, vector<16x32xbf16>
      %36 = arith.extf %35 : vector<16x32xbf16> to vector<16x32xf32>
      %37 = arith.addf %34, %36 : vector<16x32xf32>
      %cst_25 = arith.constant dense<0.000000e+00> : vector<16xf32>
      %38 = vector.multi_reduction <add>, %37, %cst_25 [1] : vector<16x32xf32> to vector<16xf32>
      %39 = vector.shape_cast %38 : vector<16xf32> to vector<16x1xf32>
      %cst_26 = arith.constant 3.200000e+01 : f32
      %40 = vector.broadcast %cst_26 : f32 to vector<16x1xf32>
      %41 = arith.divf %39, %40 : vector<16x1xf32>
      %42 = vector.broadcast %41 : vector<16x1xf32> to vector<16x32xf32>
      %43 = arith.subf %37, %42 : vector<16x32xf32>
      %44 = arith.mulf %43, %43 : vector<16x32xf32>
      %cst_27 = arith.constant dense<0.000000e+00> : vector<16xf32>
      %45 = vector.multi_reduction <add>, %44, %cst_27 [1] : vector<16x32xf32> to vector<16xf32>
      %46 = vector.shape_cast %45 : vector<16xf32> to vector<16x1xf32>
      %cst_28 = arith.constant 3.200000e+01 : f32
      %47 = vector.broadcast %cst_28 : f32 to vector<16x1xf32>
      %48 = arith.divf %46, %47 : vector<16x1xf32>
      %cst_29 = arith.constant 9.99999996E-13 : f32
      %49 = vector.broadcast %cst_29 : f32 to vector<16x1xf32>
      %50 = arith.addf %48, %49 : vector<16x1xf32>
      %51 = math.rsqrt %50 : vector<16x1xf32>
      %52 = vector.broadcast %51 : vector<16x1xf32> to vector<16x32xf32>
      %53 = arith.mulf %43, %52 : vector<16x32xf32>
      %c0_30 = arith.constant 0 : index
      %c0_31 = arith.constant 0 : index
      %54 = vector.load %arg7[%c0_30, %c0_31] : memref<1x32xf32, #tpu.memory_space<vmem>>, vector<1x32xf32>
      %55 = vector.broadcast %54 : vector<1x32xf32> to vector<16x32xf32>
      %56 = arith.mulf %53, %55 : vector<16x32xf32>
      %c0_32 = arith.constant 0 : index
      %c0_33 = arith.constant 0 : index
      %57 = vector.load %arg8[%c0_32, %c0_33] : memref<1x32xf32, #tpu.memory_space<vmem>>, vector<1x32xf32>
      %58 = vector.broadcast %57 : vector<1x32xf32> to vector<16x32xf32>
      %59 = arith.addf %56, %58 : vector<16x32xf32>
      %60 = arith.truncf %59 : vector<16x32xf32> to vector<16x32xbf16>
      %c0_34 = arith.constant 0 : index
      %c0_35 = arith.constant 0 : index
      %61 = vector.load %arg9[%c0_34, %c0_35] : memref<16x32xbf16, #tpu.memory_space<vmem>>, vector<16x32xbf16>
      tpu.vector_store %arg9[%c0_34, %c0_35], %60 {strides = array<i32>} : memref<16x32xbf16, #tpu.memory_space<vmem>>, vector<16x32xbf16>,
    } else {
    }
    return
  }
  func.func @transform_0(%arg0: i32, %arg1: i32) -> (i32, i32) {
    %c0_i32 = arith.constant 0 : i32
    %c0_i32_0 = arith.constant 0 : i32
    return %arg0, %c0_i32 : i32, i32
  }
  func.func @transform_1(%arg0: i32, %arg1: i32) -> (i32, i32) {
    %c0_i32 = arith.constant 0 : i32
    %c0_i32_0 = arith.constant 0 : i32
    return %c0_i32, %arg1 : i32, i32
  }
  func.func @transform_2(%arg0: i32, %arg1: i32) -> (i32, i32) {
    %c0_i32 = arith.constant 0 : i32
    %c0_i32_0 = arith.constant 0 : i32
    return %c0_i32, %arg1 : i32, i32
  }
  func.func @transform_3(%arg0: i32, %arg1: i32) -> (i32, i32) {
    %c0_i32 = arith.constant 0 : i32
    %c0_i32_0 = arith.constant 0 : i32
    return %arg1, %c0_i32 : i32, i32
  }
  func.func @transform_4(%arg0: i32, %arg1: i32) -> (i32, i32) {
    %c0_i32 = arith.constant 0 : i32
    %c0_i32_0 = arith.constant 0 : i32
    %c0_i32_1 = arith.constant 0 : i32
    return %c0_i32, %c0_i32_0 : i32, i32
  }
  func.func @transform_5(%arg0: i32, %arg1: i32) -> (i32, i32) {
    %c0_i32 = arith.constant 0 : i32
    %c0_i32_0 = arith.constant 0 : i32
    %c0_i32_1 = arith.constant 0 : i32
    return %c0_i32, %c0_i32_0 : i32, i32
  }
  func.func @transform_6(%arg0: i32, %arg1: i32) -> (i32, i32) {
    %c0_i32 = arith.constant 0 : i32
    %c0_i32_0 = arith.constant 0 : i32
    %c0_i32_1 = arith.constant 0 : i32
    return %c0_i32, %c0_i32_0 : i32, i32
  }
  func.func @transform_7(%arg0: i32, %arg1: i32) -> (i32, i32) {
    %c0_i32 = arith.constant 0 : i32
    %c0_i32_0 = arith.constant 0 : i32
    return %arg0, %c0_i32 : i32, i32
  }
}

</mosaic_0001>

<bundles_post_ra>
// kernel: bert_encoder_forward.11
= control target key start
LH: loop header
LB: loop body
LE: loop exit
PB: predicated region body
PF: predicated region fallthrough
CT: control target
= control target key end

     0   :  { %v145_v1 = vmov 0.0   ;;  %vm146_vm0 = vmmov 0   ;;  %s183_s0 = inlined_call_operand.vmem [shape: bf16[2,32], index: 0, kind: input, shape index: {}]   ;;  %s184_s1 = inlined_call_operand.vmem [shape: bf16[32,32], index: 1, kind: input, shape index: {}]   ;;  %s185_s2 = inlined_call_operand.vmem [shape: f32[1,32], index: 2, kind: input, shape index: {}]   ;;  %s186_s3 = inlined_call_operand.hbm [shape: f32[2,32], index: 3, kind: output, shape index: {}]  }
   0x1   :  { %v119_v0 = vld [vmem:[%s184_s1 + $0x8] sm:$0xff]   ;;  %108 = vmatprep.subr.bf16.mxu0 %v145_v1  ;;  %v120_v2 = vld [vmem:[%s184_s1] sm:$0xff]   ;;  %112 = vmatprep.mubr.msk.bf16.mxu0 %vm146_vm0, %v145_v1 }
   0x2   :  { %109 = vmatpush3.bf16.msra.mxu0 %v119_v0 }
   0x3   :  { %110 = vmatprep.subr.bf16.mxu0 %v145_v1 }
   0x4   :  { %8 = vsyncpa [#allocation3], 0  ;;  %v16_v3 = vld [vmem:[%s183_s0] sm:$0x1]  ;;  %vm40_vm1 = vcmask 261120   ;;  %s147_s1 = smov [#allocation2]  }
   0x5   :  { %v101_v4 = vld [vmem:[%s185_s2] ss:$0 sm:$0xff]  ;;  %s93_s20 = sshll.u32 %s147_s1, 4  ;;  %vm85_vm2 = vcmask 254976   ;;  %s94_s20 = int_to_ptr.vmem [resolvable:$true] %s93_s20 }
   0x6   :  { %111 = vmatpush3.bf16.msra.mxu0 %v120_v2  ;;  %s123_s21 = scalar_lea.vmem %s94_s20, 32  ;;  %p128_p1 = scmp.lt.s32.totalorder %s94_s20, %s94_s20 }
   0x7   :  { %p124_p0 = scmp.ne.s32.totalorder %s94_s20, %s123_s21  ;;  %p129_p2 = scmp.lt.s32.totalorder %s123_s21, %s123_s21 }
   0x9   :  { %113 = vmatmul.mubr.msk.bf16.vlgmr.msra.gmra.mxu0 %vm40_vm1, %v16_v3  ;;  %p130_p3 = por %p129_p2, %p128_p1 }
   0xb   :  { %p131_p4 = pnand %p130_p3, %p124_p0 }
  0xc9   :  { %v78_v5 = vpop.f32.mrf.mxu0 }
  0xca   :  { %v79_v6 = vadd.f32 %v101_v4, %v78_v5 }
  0xcb   :  { %v114_v7 = vpop.f32.mrf.mxu0 }
  0xcc   :  { %121 = vtanh.f32 %v79_v6 }
  0xcd   :  { %v81_v8 = vpop.f32.mrf.mxu0 }
  0xcf   :  { %v115_v9 = vpop.f32.mrf.mxu0 }
  0xd9   :  { %v122_v10 = vpop.eup %121 }
  0xda   :  { %86 = vst.msk [vmem:[#allocation2] sm:$0x3] %vm85_vm2, %v122_v10 }
  0xdb   :  { %134 = shalt.err (!%p131_p4)
}
  0xdc   :  { %96 = dma.vmem_to_hbm [thread:$0]  %s94_s20, 32, %s186_s3, [#allocation3]  }
  0xdd   :  { %143 = dma.done.wait [#allocation3], 32  }
  0xde   :  { %144 = vsyncadd [#allocation3], 4294967264 }
  0xdf   :  { %100 = vsyncpa [#allocation3], 1 }

// kernel: bert_encoder_forward.6
= control target key start
LH: loop header
LB: loop body
LE: loop exit
PB: predicated region body
PF: predicated region fallthrough
CT: control target
= control target key end

     0   :  { %vm16_vm0 = vcmask 261120   ;;  %vm70_vm1 = vcmask 257024   ;;  %s129_s0 = inlined_call_operand.vmem [shape: f32[16,32], index: 0, kind: input, shape index: {}]   ;;  %s130_s1 = inlined_call_operand.vmem [shape: f32[1,32], index: 1, kind: input, shape index: {}]   ;;  %s131_s2 = inlined_call_operand.vmem [shape: f32[1,32], index: 2, kind: input, shape index: {}]   ;;  %s132_s3 = inlined_call_operand.vmem [shape: bf16[16,32], index: 3, kind: output, shape index: {}]  }
   0x1   :  { %v14_v0 = vld [vmem:[%s129_s0] sm:$0xff]  ;;  %v15_v1 = vld [vmem:[%s129_s0 + $0x8] sm:$0xff] }
   0x2   :  { %v17_v2 = vsel %vm16_vm0, %v14_v0, 0.0  ;;  %v20_v3 = vsel %vm16_vm0, %v15_v1, 0.0  ;;  %v77_v21 = vld [vmem:[%s130_s1] ss:$0 sm:$0xff] }
   0x3   :  { %18 = vadd.xlane.f32.xlu0 %v17_v2  ;;  %v78_v23 = vld [vmem:[%s131_s2] ss:$0 sm:$0xff] }
   0x7   :  { %21 = vadd.xlane.f32.xlu0 %v20_v3 }
  0x8c   :  { %v19_v4 = vpop.xlane.xlu0 %18 }
  0x8d   :  { %v24_v5 = vmul.f32 0.03125, %v19_v4 }
  0x8f   :  { %v26_v6 = vsub.f32 %v14_v0, %v24_v5 }
  0x90   :  { %v22_v7 = vpop.xlane.xlu0 %21 }
  0x91   :  { %v25_v8 = vmul.f32 0.03125, %v22_v7  ;;  %v28_v9 = vmul.f32 %v26_v6, %v26_v6 }
  0x93   :  { %v27_v10 = vsub.f32 %v15_v1, %v25_v8  ;;  %v30_v11 = vsel %vm16_vm0, %v28_v9, 0.0 }
  0x94   :  { %31 = vadd.xlane.f32.xlu1 %v30_v11 }
  0x95   :  { %v29_v12 = vmul.f32 %v27_v10, %v27_v10 }
  0x97   :  { %v33_v13 = vsel %vm16_vm0, %v29_v12, 0.0 }
  0x98   :  { %34 = vadd.xlane.f32.xlu1 %v33_v13 }
 0x11d   :  { %v32_v14 = vpop.xlane.xlu1 %31 }
 0x11e   :  { %v36_v15 = vmul.f32 0.03125, %v32_v14 }
 0x120   :  { %v38_v16 = vadd.f32 1e-12, %v36_v15 }
 0x121   :  { %v35_v17 = vpop.xlane.xlu1 %34 }
 0x122   :  { %83 = vrsqrt.f32 %v38_v16  ;;  %v37_v18 = vmul.f32 0.03125, %v35_v17 }
 0x124   :  { %v39_v19 = vadd.f32 1e-12, %v37_v18 }
 0x126   :  { %85 = vrsqrt.f32 %v39_v19 }
 0x12f   :  { %v84_v20 = vpop.eup %83 }
 0x130   :  { %v42_v22 = vmul.f32 %v84_v20, %v26_v6 }
 0x132   :  { %v51_v24 = vmul.f32 %v77_v21, %v42_v22 }
 0x133   :  { %v86_v25 = vpop.eup %85 }
 0x134   :  { %v60_v26 = vadd.f32 %v78_v23, %v51_v24  ;;  %v43_v27 = vmul.f32 %v86_v25, %v27_v10 }
 0x136   :  { %v81_v28 = vpack.c.bf16 %v60_v26, %v60_v26  ;;  %v52_v29 = vmul.f32 %v77_v21, %v43_v27 }
 0x138   :  { %71 = vst.msk [vmem:[%s132_s3] sm:$0xf] %vm70_vm1, %v81_v28  ;;  %v61_v30 = vadd.f32 %v78_v23, %v52_v29 }
 0x13a   :  { %v82_v31 = vpack.c.bf16 %v61_v30, %v61_v30 }
 0x13c   :  { %72 = vst.msk [vmem:[%s132_s3 + $0x4] sm:$0xf] %vm70_vm1, %v82_v31 }

// kernel: bert_encoder_forward.8
= control target key start
LH: loop header
LB: loop body
LE: loop exit
PB: predicated region body
PF: predicated region fallthrough
CT: control target
= control target key end

     0   :  { %vm31_vm0 = vcmask 261120   ;;  %v357_v0 = vmov 0.0   ;;  %vm358_vm1 = vmmov 0   ;;  %vm162_vm2 = vcmask 523264   ;;  %s450_s1 = inlined_call_operand.vmem [shape: bf16[32,64], index: 1, kind: input, shape index: {}]   ;;  %s451_s0 = inlined_call_operand.vmem [shape: bf16[16,32], index: 0, kind: input, shape index: {}]   ;;  %s452_s3 = inlined_call_operand.vmem [shape: bf16[64,32], index: 3, kind: input, shape index: {}]   ;;  %s453_s2 = inlined_call_operand.vmem [shape: f32[1,64], index: 2, kind: input, shape index: {}]   ;;  %s454_s4 = inlined_call_operand.vmem [shape: f32[1,32], index: 4, kind: input, shape index: {}]   ;;  %s455_s5 = inlined_call_operand.vmem [shape: f32[1,32], index: 5, kind: input, shape index: {}]   ;;  %s456_s6 = inlined_call_operand.vmem [shape: f32[1,32], index: 6, kind: input, shape index: {}]   ;;  %s457_s7 = inlined_call_operand.vmem [shape: bf16[16,32], index: 7, kind: output, shape index: {}]  }
   0x1   :  { %320 = vmatprep.subr.bf16.mxu0 %v357_v0  ;;  %v342_v1 = vld [vmem:[%s450_s1 + $0x8] sm:$0xff]   ;;  %324 = vmatprep.mubr.msk.bf16.mxu0 %vm358_vm1, %v357_v0  ;;  %32 = vst.msk [vmem:[#allocation2] sm:$0xff] %vm31_vm0, %v357_v0  ;;  %33 = vst.msk [vmem:[#allocation2 + $0x8] sm:$0xff] %vm31_vm0, %v357_v0  ;;  %v343_v2 = vld [vmem:[%s450_s1] sm:$0xff]   ;;  %vm284_vm3 = vcmask 257024  }
   0x2   :  { %328 = vmatprep.subr.bf16.mxu1 %v357_v0  ;;  %336 = vmatprep.mubr.msk.bf16.mxu1 %vm358_vm1, %v357_v0  ;;  %v344_v3 = vld [vmem:[%s451_s0] sm:$0xff]   ;;  %v345_v4 = vld [vmem:[%s452_s3 + $0x18] sm:$0xff]   ;;  %v346_v5 = vld [vmem:[%s452_s3 + $0x10] sm:$0xff]  }
   0x3   :  { %321 = vmatpush3.bf16.msra.mxu0 %v342_v1  ;;  %329 = vmatpush3.bf16.msra.mxu1 %v345_v4  ;;  %v347_v6 = vld [vmem:[%s452_s3 + $0x8] sm:$0xff]   ;;  %v348_v7 = vld [vmem:[%s452_s3] sm:$0xff]  }
   0x4   :  { %322 = vmatprep.subr.bf16.mxu0 %v357_v0  ;;  %330 = vmatprep.subr.bf16.mxu1 %v357_v0  ;;  %v291_v8 = vld [vmem:[%s453_s2] ss:$0 sm:$0xff] }
   0x5   :  { %v309_v42 = vld [vmem:[%s451_s0] sm:$0xff]  }
   0x6   :  { %v301_v43 = vld [vmem:[%s454_s4] ss:$0 sm:$0xff]  ;;  %v310_v44 = vunpack.c.l.bf16 %v309_v42  ;;  %v311_v48 = vunpack.c.h.bf16 %v309_v42 }
   0x7   :  { %323 = vmatpush3.bf16.msra.mxu0 %v343_v2  ;;  %331 = vmatpush3.bf16.msra.mxu1 %v346_v5 }
   0x8   :  { %332 = vmatprep.subr.bf16.mxu1 %v357_v0  ;;  %v127_v34 = vld [vmem:[#allocation2] sm:$0xff]  ;;  %v128_v38 = vld [vmem:[#allocation2 + $0x8] sm:$0xff] }
   0xa   :  { %325 = vmatmul.mubr.msk.bf16.vlgmr.msra.gmra.mxu0 %vm31_vm0, %v344_v3 }
   0xb   :  { %333 = vmatpush3.bf16.msra.mxu1 %v347_v6 }
   0xc   :  { %334 = vmatprep.subr.bf16.mxu1 %v357_v0 }
   0xf   :  { %335 = vmatpush3.bf16.msra.mxu1 %v348_v7  ;;  %v302_v7 = vld [vmem:[%s455_s5] ss:$0 sm:$0xff] }
  0xca   :  { %v102_v9 = vpop.f32.mrf.mxu0 }
  0xcb   :  { %v103_v10 = vadd.f32 %v291_v8, %v102_v9  ;;  %v303_v9 = vld [vmem:[%s456_s6] ss:$0 sm:$0xff] }
  0xcc   :  { %v326_v11 = vpop.f32.mrf.mxu0 }
  0xcd   :  { %v111_v12 = vmul.f32 0.044715, %v103_v10  ;;  %v109_v28 = vmul.f32 0.5, %v103_v10 }
  0xce   :  { %v105_v13 = vpop.f32.mrf.mxu0 }
  0xcf   :  { %v113_v14 = vmul.f32 %v111_v12, %v103_v10  ;;  %v106_v15 = vadd.f32 %v291_v8, %v105_v13 }
  0xd0   :  { %v327_v16 = vpop.f32.mrf.mxu0 }
  0xd1   :  { %v115_v17 = vmul.f32 %v113_v14, %v103_v10  ;;  %v112_v18 = vmul.f32 0.044715, %v106_v15  ;;  %v110_v29 = vmul.f32 0.5, %v106_v15 }
  0xd3   :  { %v117_v19 = vadd.f32 %v115_v17, %v103_v10  ;;  %v114_v20 = vmul.f32 %v112_v18, %v106_v15 }
  0xd5   :  { %v119_v21 = vmul.f32 0.7978846, %v117_v19  ;;  %v116_v22 = vmul.f32 %v114_v20, %v106_v15 }
  0xd7   :  { %349 = vtanh.f32 %v119_v21  ;;  %v118_v23 = vadd.f32 %v116_v22, %v106_v15 }
  0xd9   :  { %v120_v24 = vmul.f32 0.7978846, %v118_v23 }
  0xdb   :  { %351 = vtanh.f32 %v120_v24 }
  0xe4   :  { %v350_v25 = vpop.eup %349 }
  0xe5   :  { %v123_v26 = vadd.f32 1.0, %v350_v25 }
  0xe7   :  { %v125_v31 = vmul.f32 %v123_v26, %v109_v28 }
  0xe8   :  { %v352_v27 = vpop.eup %351 }
  0xe9   :  { %v124_v30 = vadd.f32 1.0, %v352_v27 }
  0xeb   :  { %v126_v32 = vmul.f32 %v124_v30, %v110_v29 }
  0xed   :  { %v129_v33 = vpack.c.bf16 %v126_v32, %v125_v31 }
  0xef   :  { %337 = vmatmul.mubr.msk.bf16.vlgmr.msra.gmra.mxu1 %vm162_vm2, %v129_v33 }
 0x1af   :  { %v200_v35 = vpop.f32.mrf.mxu1 }
 0x1b0   :  { %v207_v36 = vadd.f32 %v200_v35, %v127_v34 }
 0x1b1   :  { %v338_v37 = vpop.f32.mrf.mxu1 }
 0x1b2   :  { %209 = vst.msk [vmem:[#allocation2] sm:$0xff] %vm31_vm0, %v207_v36 }
 0x1b3   :  { %v203_v39 = vpop.f32.mrf.mxu1 }
 0x1b4   :  { %v208_v40 = vadd.f32 %v203_v39, %v128_v38 }
 0x1b5   :  { %v339_v41 = vpop.f32.mrf.mxu1 }
 0x1b6   :  { %210 = vst.msk [vmem:[#allocation2 + $0x8] sm:$0xff] %vm31_vm0, %v208_v40 }
 0x1b9   :  { %v214_v45 = vld [vmem:[#allocation2] sm:$0xff] }
 0x1ba   :  { %v223_v46 = vadd.f32 %v301_v43, %v214_v45 }
 0x1bc   :  { %v229_v47 = vadd.f32 %v310_v44, %v223_v46 }
 0x1bd   :  { %v215_v49 = vld [vmem:[#allocation2 + $0x8] sm:$0xff] }
 0x1be   :  { %v231_v50 = vsel %vm31_vm0, %v229_v47, 0.0  ;;  %v224_v51 = vadd.f32 %v301_v43, %v215_v49 }
 0x1bf   :  { %232 = vadd.xlane.f32.xlu0 %v231_v50 }
 0x1c0   :  { %v230_v52 = vadd.f32 %v311_v48, %v224_v51 }
 0x1c2   :  { %v234_v53 = vsel %vm31_vm0, %v230_v52, 0.0 }
 0x1c3   :  { %235 = vadd.xlane.f32.xlu0 %v234_v53 }
 0x248   :  { %v233_v54 = vpop.xlane.xlu0 %232 }
 0x249   :  { %v238_v55 = vmul.f32 0.03125, %v233_v54 }
 0x24b   :  { %v240_v56 = vsub.f32 %v229_v47, %v238_v55 }
 0x24c   :  { %v236_v57 = vpop.xlane.xlu0 %235 }
 0x24d   :  { %v239_v58 = vmul.f32 0.03125, %v236_v57  ;;  %v242_v59 = vmul.f32 %v240_v56, %v240_v56 }
 0x24f   :  { %v241_v60 = vsub.f32 %v230_v52, %v239_v58  ;;  %v244_v61 = vsel %vm31_vm0, %v242_v59, 0.0 }
 0x250   :  { %245 = vadd.xlane.f32.xlu1 %v244_v61 }
 0x251   :  { %v243_v62 = vmul.f32 %v241_v60, %v241_v60 }
 0x253   :  { %v247_v63 = vsel %vm31_vm0, %v243_v62, 0.0 }
 0x254   :  { %248 = vadd.xlane.f32.xlu1 %v247_v63 }
 0x2d9   :  { %v246_v0 = vpop.xlane.xlu1 %245 }
 0x2da   :  { %v250_v1 = vmul.f32 0.03125, %v246_v0 }
 0x2dc   :  { %v252_v2 = vadd.f32 1e-12, %v250_v1 }
 0x2dd   :  { %v249_v3 = vpop.xlane.xlu1 %248 }
 0x2de   :  { %353 = vrsqrt.f32 %v252_v2  ;;  %v251_v4 = vmul.f32 0.03125, %v249_v3 }
 0x2e0   :  { %v253_v5 = vadd.f32 1e-12, %v251_v4 }
 0x2e2   :  { %355 = vrsqrt.f32 %v253_v5 }
 0x2eb   :  { %v354_v6 = vpop.eup %353 }
 0x2ec   :  { %v256_v8 = vmul.f32 %v354_v6, %v240_v56 }
 0x2ee   :  { %v265_v10 = vmul.f32 %v302_v7, %v256_v8 }
 0x2ef   :  { %v356_v11 = vpop.eup %355 }
 0x2f0   :  { %v274_v12 = vadd.f32 %v303_v9, %v265_v10  ;;  %v257_v13 = vmul.f32 %v356_v11, %v241_v60 }
 0x2f2   :  { %v306_v14 = vpack.c.bf16 %v274_v12, %v274_v12  ;;  %v266_v15 = vmul.f32 %v302_v7, %v257_v13 }
 0x2f4   :  { %285 = vst.msk [vmem:[%s457_s7] sm:$0xf] %vm284_vm3, %v306_v14  ;;  %v275_v16 = vadd.f32 %v303_v9, %v266_v15 }
 0x2f6   :  { %v307_v17 = vpack.c.bf16 %v275_v16, %v275_v16 }
 0x2f8   :  { %286 = vst.msk [vmem:[%s457_s7 + $0x4] sm:$0xf] %vm284_vm3, %v307_v17 }

// kernel: bert_encoder_forward.7
= control target key start
LH: loop header
LB: loop body
LE: loop exit
PB: predicated region body
PF: predicated region fallthrough
CT: control target
= control target key end

     0   :  { %s996_s27 = smov 0   ;;  %s998_s28 = smov 0   ;;  %s1109_s0 = inlined_call_operand.vmem [shape: bf16[16,32], index: 0, kind: input, shape index: {}]   ;;  %s1110_s1 = inlined_call_operand.vmem [shape: bf16[2,32,48], index: 1, kind: input, shape index: {}]   ;;  %s1111_s2 = inlined_call_operand.vmem [shape: f32[2,1,48], index: 2, kind: input, shape index: {}]   ;;  %s1112_s3 = inlined_call_operand.vmem [shape: bf16[2,16,32], index: 3, kind: input, shape index: {}]   ;;  %s1113_s4 = inlined_call_operand.vmem [shape: f32[1,32], index: 4, kind: input, shape index: {}]   ;;  %s1114_s5 = inlined_call_operand.vmem [shape: f32[2,1,8], index: 5, kind: input, shape index: {}]   ;;  %s1115_s6 = inlined_call_operand.vmem [shape: f32[1,32], index: 6, kind: input, shape index: {}]   ;;  %s1116_s7 = inlined_call_operand.vmem [shape: f32[1,32], index: 7, kind: input, shape index: {}]   ;;  %s1117_s8 = inlined_call_operand.vmem [shape: bf16[16,32], index: 8, kind: output, shape index: {}]  }
   0x1   :  { %s1000_s29 = smov 0   ;;  %s1002_s30 = smov 0  }
   0x2   :  { %s1004_s9 = smov 0  }
   0x3 LB: > { %1119 = sst [smem:[#allocation3_spill]] %s940_s30  ;;  %s27_s10 = sadd.s32 1, %s936_s29  ;;  %s944_s9 = sphi %s1004_s9, %s18_s9   ;;  %s940_s30 = sphi %s1002_s30, %s1125_s30   ;;  %s936_s29 = sphi %s1000_s29, %s1127_s29   ;;  %s932_s28 = sphi %s998_s28, %s1123_s28   ;;  %s928_s27 = sphi %s996_s27, %s1126_s27  }
   0x4   : > { %s30_s11 = sadd.s32 1, %s940_s30  ;;  %p28_p0 = scmp.ge.s32.totalorder %s27_s10, 2 }
   0x5   : > { %p792_p1 = scmp.ge.s32.totalorder %s944_s9, 1  ;;  %p309_p2 = scmp.lt.s32.totalorder %s944_s9, 5 }
   0x6   : > { %s1129_s10 = smov (%p28_p0, %s27_s10), 0  ;;  %s1131_s11 = smov (!%p28_p0, %s30_s11), %s940_s30 }
   0x7   : > { %1120 = sst [smem:[#allocation4_spill]] %s1129_s10  ;;  %p310_p3 = pnand %p792_p1, %p309_p2 }
   0x8   : > { %p32_p4 = scmp.ge.s32.totalorder %s1131_s11, 2  ;;  %p357_p5 = scmp.lt.s32.totalorder (!%p310_p3), %s932_s28, 1 }
   0x9   : > { %313 = sbr.rel (%p310_p3) target bundleno = 1423 (0x58f), region = 52  ;;  %p361_p6 = scmp.lt.s32.totalorder (!%p310_p3), %s928_s27, 1 }
   0xa   : > { %s1133_s11 = smov (%p32_p4, %s1131_s11), 0  ;;  %p799_p7 = scmp.ne.s32.totalorder (!%p310_p3), %s928_s27, 0 }
   0xb   : > { %1121 = sst [smem:[#allocation5_spill]] %s1133_s11 }
   0xe   : > { %s1135_s28 = smov (!%p357_p5, %s932_s28), 1 }
   0xf   : > { %s1032_s12 = scalar_select %p361_p6, %s928_s27, 1 }
  0x10   : > { %s793_s13 = sshll.u32 %s1135_s28, 2  ;;  %385 = sbr.rel (%p799_p7) target bundleno = 23 (0x17), region = 56 }
  0x11   : > { %s1042_s19 = scalar_lea.vmem %s1109_s0, %s793_s13  ;;  %s815_s20 = sshll.u32 %s1032_s12, 4 }
  0x12   : > { %s365_s23 = scalar_lea.vmem %s1110_s1, %s815_s20  ;;  %s368_s26 = scalar_lea.vmem %s1111_s2, %s1032_s12 }
  0x13   : > { %s816_s11 = sshll.u32 %s1032_s12, 3  ;;  %s1056_s14 = scalar_lea.vmem %s1117_s8, %s793_s13 }
  0x14   : > { %s1061_s17 = scalar_lea.vmem %s1112_s3, %s816_s11 }
  0x15   : > { %vm386_vm0 = vcmask 261120   ;;  %v946_v0 = vmov 0.0  }
  0x16   : > { %387 = vst.msk [vmem:[#allocation2] sm:$0xff] %vm386_vm0, %v946_v0 }
  0x17 PF: > { %v897_v1 = vld [vmem:[%s365_s23 + $0x8] sm:$0xff]   ;;  %v947_v2 = vmov 0.0   ;;  %v898_v3 = vld [vmem:[%s365_s23] sm:$0xff]   ;;  %vm948_vm1 = vmmov 0   ;;  %vm412_vm2 = vcmask 261120   ;;  %s949_s30 = smov 96   ;;  %s1122_s13 = scalar_lea.vmem %s1114_s5, %s1135_s28 }
  0x18   : > { %826 = vmatprep.subr.bf16.mxu0 %v947_v2  ;;  %834 = vmatprep.subr.bf16.mxu1 %v947_v2  ;;  %v388_v4 = vld [vmem:[%s1042_s19] sm:$0xf]  ;;  %s950_s10 = smov 112   ;;  %vm532_vm3 = vcmask 1043456   ;;  %vm460_vm4 = vcmask 130048   ;;  %vm516_vm5 = vcmask 64512  }
  0x19   : > { %827 = vmatpush3.bf16.msra.mxu0 %v897_v1  ;;  %830 = vmatprep.mubr.msk.bf16.mxu0 %vm948_vm1, %v947_v2  ;;  %v800_v5 = vld [vmem:[%s368_s26] ss:$0 sm:$0xff]  ;;  %p809_p8 = scmp.ne.s32.totalorder %s928_s27, 1 }
  0x1a   : > { %828 = vmatprep.subr.bf16.mxu0 %v947_v2  ;;  %836 = vmatprep.mubr.msk.bf16.mxu1 %vm948_vm1, %v947_v2  ;;  %v805_v17 = vld [vmem:[%s1122_s13] ss:$0 sm:$0xff] }
  0x1b   : > { %v899_v30 = vld [vmem:[%s1061_s17] sm:$0xff]  }
  0x1d   : > { %829 = vmatpush3.bf16.msra.mxu0 %v898_v3  ;;  %v578_v39 = vld [vmem:[#allocation2] sm:$0xff] }
  0x1e   : > { %840 = vmatprep.subr.bf16.mxu0 %v947_v2 }
  0x20   : > { %831 = vmatmul.mubr.msk.bf16.vlgmr.msra.gmra.mxu0 %vm412_vm2, %v388_v4 }
  0x21   : > { %842 = vmatprep.mubr.msk.bf16.mxu0 %vm948_vm1, %v947_v2 }
  0xe0   : > { %v450_v6 = vpop.f32.mrf.mxu0 }
  0xe1   : > { %v451_v7 = vadd.f32 %v800_v5, %v450_v6 }
  0xe2   : > { %v832_v8 = vpop.f32.mrf.mxu0 }
  0xe3   : > { %v456_v9 = vpack.c.bf16 %v451_v7, %v451_v7 }
  0xe4   : > { %v453_v10 = vpop.f32.mrf.mxu0 }
  0xe5   : > { %527 = vrot.lane.b32.xlu1 %v456_v9, %s949_s30  ;;  %458 = vrot.lane.b32.xlu0 %v456_v9, %s950_s10 }
  0xe6   : > { %v833_v11 = vpop.f32.mrf.mxu0 }
 0x157   : > { %v528_v12 = vpop.permute.xlu1 %527  ;;  %v459_v13 = vpop.permute.xlu0 %458 }
 0x158   : > { %v534_v14 = vsel %vm532_vm3, %v528_v12, 0  ;;  %v465_v15 = vsel %vm460_vm4, %v459_v13, 0 }
 0x159   : > { %835 = vmatpush3.bf16.xpose.msra.mxu1 %v465_v15  ;;  %841 = vmatpush3.bf16.msra.mxu0 %v534_v14 }
 0x15a   : > { %846 = vmatprep.subr.bf16.mxu1 %v947_v2 }
 0x160   : > { %837 = vmatmul.mubr.msk.bf16.vlgmr.msra.gmra.mxu1 %vm460_vm4, %v456_v9 }
 0x161   : > { %848 = vmatprep.mubr.msk.bf16.mxu1 %vm948_vm1, %v947_v2  ;;  %847 = vmatpush3.bf16.msra.mxu1 %v899_v30 }
 0x220   : > { %v501_v16 = vpop.f32.mrf.mxu1 }
 0x221   : > { %v507_v18 = vmul.f32 0.25, %v501_v16 }
 0x222   : > { %v838_v19 = vpop.f32.mrf.mxu1 }
 0x223   : > { %v515_v20 = vadd.f32 %v805_v17, %v507_v18 }
 0x224   : > { %v504_v21 = vpop.f32.mrf.mxu1 }
 0x225   : > { %v517_v22 = vsel %vm516_vm5, %v515_v20, -inf }
 0x226   : > { %518 = vmax.xlane.f32.xlu0 %v517_v22  ;;  %v839_v23 = vpop.f32.mrf.mxu1 }
 0x2af   : > { %v519_v24 = vpop.xlane.xlu0 %518 }
 0x2b0   : > { %v520_v25 = vsub.f32 %v515_v20, %v519_v24 }
 0x2b2   : > { %v521_v26 = vmul.f32 1.442695, %v520_v25 }
 0x2b4   : > { %900 = vpow2.f32 %v521_v26 }
 0x2c1   : > { %v901_v27 = vpop.eup %900 }
 0x2c2   : > { %v523_v28 = vsel %vm516_vm5, %v901_v27, 0.0  ;;  %v526_v29 = vpack.c.bf16 %v901_v27, %v901_v27 }
 0x2c3   : > { %524 = vadd.xlane.f32.xlu1 %v523_v28 }
 0x2c4   : > { %843 = vmatmul.mubr.msk.bf16.vlgmr.msra.gmra.mxu0 %vm516_vm5, %v526_v29 }
 0x34c   : > { %v525_v31 = vpop.xlane.xlu1 %524 }
 0x34d   : > { %902 = vrcp.f32 %v525_v31 }
 0x35a   : > { %v903_v32 = vpop.eup %902 }
 0x384   : > { %v570_v33 = vpop.f32.mrf.mxu0 }
 0x385   : > { %v577_v34 = vmul.f32 %v903_v32, %v570_v33 }
 0x386   : > { %v844_v35 = vpop.f32.mrf.mxu0 }
 0x387   : > { %v579_v36 = vpack.c.bf16 %v577_v34, %v577_v34 }
 0x388   : > { %v573_v37 = vpop.f32.mrf.mxu0 }
 0x389   : > { %849 = vmatmul.mubr.msk.bf16.vlgmr.msra.gmra.mxu1 %vm460_vm4, %v579_v36 }
 0x38a   : > { %v845_v38 = vpop.f32.mrf.mxu0 }
 0x449   : > { %v625_v40 = vpop.f32.mrf.mxu1 }
 0x44a   : > { %v631_v41 = vadd.f32 %v625_v40, %v578_v39 }
 0x44b   : > { %v850_v42 = vpop.f32.mrf.mxu1  ;;  %636 = sbr.rel (%p809_p8) target bundleno = 1423 (0x58f), region = 60 }
 0x44c   : > { %632 = vst.msk [vmem:[#allocation2] sm:$0xff] %vm412_vm2, %v631_v41 }
 0x44d   : > { %v628_v43 = vpop.f32.mrf.mxu1 }
 0x44f   : > { %v851_v44 = vpop.f32.mrf.mxu1 }
 0x450   : > { %v810_v46 = vld [vmem:[%s1113_s4] ss:$0 sm:$0xff]  ;;  %vm680_vm6 = vcmask 257024  }
 0x451   : > { %v646_v47 = vld [vmem:[%s1042_s19] sm:$0xf] }
 0x452   : > { %v647_v49 = vunpack.c.l.bf16 %v646_v47  ;;  %v811_v61 = vld [vmem:[%s1115_s6] ss:$0 sm:$0xff] }
 0x453   : > { %v637_v45 = vld [vmem:[#allocation2] sm:$0xff] }
 0x454   : > { %v645_v48 = vadd.f32 %v810_v46, %v637_v45  ;;  %v812_v63 = vld [vmem:[%s1116_s7] ss:$0 sm:$0xff] }
 0x456   : > { %v648_v50 = vadd.f32 %v647_v49, %v645_v48 }
 0x458   : > { %v649_v51 = vsel %vm412_vm2, %v648_v50, 0.0 }
 0x459   : > { %650 = vadd.xlane.f32.xlu0 %v649_v51 }
 0x4e2   : > { %v651_v52 = vpop.xlane.xlu0 %650 }
 0x4e3   : > { %v653_v53 = vmul.f32 0.03125, %v651_v52 }
 0x4e5   : > { %v654_v54 = vsub.f32 %v648_v50, %v653_v53 }
 0x4e7   : > { %v655_v55 = vmul.f32 %v654_v54, %v654_v54 }
 0x4e9   : > { %v656_v56 = vsel %vm412_vm2, %v655_v55, 0.0 }
 0x4ea   : > { %657 = vadd.xlane.f32.xlu0 %v656_v56 }
 0x573   : > { %v658_v57 = vpop.xlane.xlu0 %657 }
 0x574   : > { %v659_v58 = vmul.f32 0.03125, %v658_v57 }
 0x576   : > { %v660_v59 = vadd.f32 1e-12, %v659_v58 }
 0x578   : > { %904 = vrsqrt.f32 %v660_v59 }
 0x585   : > { %v905_v60 = vpop.eup %904 }
 0x586   : > { %v662_v62 = vmul.f32 %v905_v60, %v654_v54 }
 0x588   : > { %v670_v0 = vmul.f32 %v811_v61, %v662_v62 }
 0x58a   : > { %v678_v1 = vadd.f32 %v812_v63, %v670_v0 }
 0x58c   : > { %v679_v2 = vpack.c.bf16 %v678_v1, %v678_v1 }
 0x58e   : > { %681 = vst.msk [vmem:[%s1056_s14] sm:$0xf] %vm680_vm6, %v679_v2 }
 0x58f PF: > { %s18_s9 = sadd.s32 1, %s944_s9   ;;  %s1123_s28 = sld [smem:[#allocation3_spill]] }
 0x590   : > { %p15_p9 = scmp.ge.s32.totalorder %s18_s9, 6   ;;  %s1124_s21 = sld [smem:[#allocation4_spill]] }
 0x591   : > { %s1125_s30 = sld [smem:[#allocation5_spill]]  ;;  %s1126_s27 = smov %s936_s29 }
 0x592   :  { %17 = sbr.rel (!%p15_p9) target bundleno = 3 (0x3), region = 102 }
 0x596   : > { %s1127_s29 = smov %s1124_s21 }

</bundles_post_ra>
